<compile_context>
chip_gen: v5e
topology: v5e:2x2
jax: 0.10.0
libtpu: 0.0.40
codegen_flags: <defaults>
</compile_context>

<pallas_src>
import jax
import jax.numpy as jnp
from jax.experimental import pallas as pl
from jax.experimental.pallas import tpu as pltpu


def _make_kernel(TB, N_pad, N_true, x_dim, d, z1):
    inv_n = 1.0 / float(N_true)
    needs_mask = N_pad != N_true

    def kernel(x_ref,
               g1w, g1b, l1w,
               g2w, g2b, l2w,
               g3w, g3b, l3w,
               w4, b4, w5, b5,
               out_ref):
        # x_ref: (TB * N_pad, x_dim) — batch-tile rows already flattened wrapper-side.
        h = x_ref[...]

        if needs_mask:
            set_pos = jax.lax.broadcasted_iota(jnp.int32, (TB, N_pad, 1), 1)
            valid = set_pos < N_true

        def pe2_mean_tanh(h2d, gw_ref, gb_ref, lw_ref, in_dim):
            # Gamma on all rows: (TB*N_pad, in) @ (in, d) + (1, d)
            gamma = jnp.dot(h2d, gw_ref[...],
                            preferred_element_type=jnp.float32) + gb_ref[...]
            # Lambda on the per-set mean (exact by linearity): (TB, in) @ (in, d)
            h3 = h2d.reshape(TB, N_pad, in_dim)
            if needs_mask:
                h3 = jnp.where(valid, h3, 0.0)
            xm = jnp.sum(h3, axis=1) * inv_n                    # (TB, in)
            lam = jnp.dot(xm, lw_ref[...],
                          preferred_element_type=jnp.float32)   # (TB, d)
            out3 = gamma.reshape(TB, N_pad, d) - lam.reshape(TB, 1, d)
            return jnp.tanh(out3).reshape(TB * N_pad, d)

        h = pe2_mean_tanh(h, g1w, g1b, l1w, x_dim)
        h = pe2_mean_tanh(h, g2w, g2b, l2w, d)
        h = pe2_mean_tanh(h, g3w, g3b, l3w, d)

        # max over the set
        h3 = h.reshape(TB, N_pad, d)
        if needs_mask:
            h3 = jnp.where(valid, h3, -jnp.inf)
        pooled = jnp.max(h3, axis=1)                            # (TB, d)

        # ro: Linear -> Tanh -> Linear
        r = jnp.tanh(
            jnp.dot(pooled, w4[...], preferred_element_type=jnp.float32) + b4[...]
        )
        out = jnp.dot(r, w5[...], preferred_element_type=jnp.float32) + b5[...]
        out_ref[...] = out.astype(out_ref.dtype)

    return kernel


def _choose_tb(B, N_pad, target_rows=1024):
    """Batch elements per grid step.  TB*N_pad ~= target_rows amortizes the ~0.35 us
    per-step overhead; the grid is kept >= 2 steps (when B is large enough) so v7x's
    two TensorCores both get work; TB is a multiple of 8 when >= 8 so block sublane
    dims stay tile-aligned."""
    tb = max(1, target_rows // max(N_pad, 1))
    if B >= 16:               # keep >= 2 grid steps for megacore/v7x sharding
        tb = min(tb, B // 2)
    tb = min(tb, B)
    if tb >= 8:
        tb = (tb // 8) * 8
    return max(tb, 1)


def g_inv_tanh(x, params, target_rows=1024):
    """x: (B, N, x_dim) float32.  params: dict of weights (see init_params)."""
    B, N, x_dim = x.shape
    d = params["g1w"].shape[1]
    z1 = params["w5"].shape[1]

    # Pad the set dimension to a multiple of 8 so in-kernel reshapes are sublane
    # regroups only (mean / max are masked in-kernel when padding is active).
    N_pad = ((N + 7) // 8) * 8
    if N_pad != N:
        x = jnp.pad(x, ((0, 0), (0, N_pad - N), (0, 0)))

    TB = _choose_tb(B, N_pad, target_rows)
    B_pad = ((B + TB - 1) // TB) * TB
    if B_pad != B:
        x = jnp.pad(x, ((0, B_pad - B), (0, 0), (0, 0)))
    grid = (B_pad // TB,)

    # Flatten to 2D wrapper-side: rows of one batch tile are contiguous, and the
    # kernel needs no input reshape at all.
    x2d = x.reshape(B_pad * N_pad, x_dim)

    kernel = _make_kernel(TB, N_pad, N, x_dim, d, z1)

    p = params
    weight_args = [p["g1w"], p["g1b"], p["l1w"],
                   p["g2w"], p["g2b"], p["l2w"],
                   p["g3w"], p["g3b"], p["l3w"],
                   p["w4"], p["b4"], p["w5"], p["b5"]]

    def wspec(arr):
        # Full-array block, constant index — loaded once, resident across the grid.
        return pl.BlockSpec(arr.shape, lambda i: (0, 0))

    out = pl.pallas_call(
        kernel,
        out_shape=jax.ShapeDtypeStruct((B_pad, z1), jnp.float32),
        grid_spec=pltpu.PrefetchScalarGridSpec(
            num_scalar_prefetch=0,
            grid=grid,
            in_specs=[pl.BlockSpec((TB * N_pad, x_dim), lambda i: (i, 0))]
                     + [wspec(w) for w in weight_args],
            out_specs=pl.BlockSpec((TB, z1), lambda i: (i, 0)),
        ),
        compiler_params=pltpu.CompilerParams(
            dimension_semantics=("parallel",),
            vmem_limit_bytes=32 << 20,
        ),
    )(x2d, *weight_args)

    if B_pad != B:
        out = out[:B]
    return out


def init_params(key, x_dim, d_dim, z1_dim):
    """Deterministic init mimicking PyTorch nn.Linear default U(-1/sqrt(in), 1/sqrt(in)).
    Weights stored as (in_dim, out_dim); biases as (1, out_dim)."""
    def linear_w(k, fan_in, fan_out):
        bound = 1.0 / jnp.sqrt(float(fan_in))
        return jax.random.uniform(k, (fan_in, fan_out), jnp.float32, -bound, bound)

    def linear_b(k, fan_in, fan_out):
        bound = 1.0 / jnp.sqrt(float(fan_in))
        return jax.random.uniform(k, (1, fan_out), jnp.float32, -bound, bound)

    ks = jax.random.split(key, 16)
    return {
        # PermEqui2_mean #1: Gamma(x_dim->d, bias), Lambda(x_dim->d, no bias)
        "g1w": linear_w(ks[0], x_dim, d_dim),
        "g1b": linear_b(ks[1], x_dim, d_dim),
        "l1w": linear_w(ks[2], x_dim, d_dim),
        # PermEqui2_mean #2
        "g2w": linear_w(ks[3], d_dim, d_dim),
        "g2b": linear_b(ks[4], d_dim, d_dim),
        "l2w": linear_w(ks[5], d_dim, d_dim),
        # PermEqui2_mean #3
        "g3w": linear_w(ks[6], d_dim, d_dim),
        "g3b": linear_b(ks[7], d_dim, d_dim),
        "l3w": linear_w(ks[8], d_dim, d_dim),
        # ro: Linear(d,d) -> Tanh -> Linear(d, z1)
        "w4": linear_w(ks[9], d_dim, d_dim),
        "b4": linear_b(ks[10], d_dim, d_dim),
        "w5": linear_w(ks[11], d_dim, z1_dim),
        "b5": linear_b(ks[12], d_dim, z1_dim),
    }


def _reference(x, p):
    """Pure-JAX reference of the PyTorch forward (sanity check)."""
    def pe2_mean(h, gw, gb, lw):
        xm = jnp.mean(h, axis=1, keepdims=True)
        return (h @ gw + gb) - (xm @ lw)

    h = jnp.tanh(pe2_mean(x, p["g1w"], p["g1b"], p["l1w"]))
    h = jnp.tanh(pe2_mean(h, p["g2w"], p["g2b"], p["l2w"]))
    h = jnp.tanh(pe2_mean(h, p["g3w"], p["g3b"], p["l3w"]))
    pooled = jnp.max(h, axis=1)
    r = jnp.tanh(pooled @ p["w4"] + p["b4"])
    return r @ p["w5"] + p["b5"]


if __name__ == "__main__":
    # Small shapes consistent with the module: set input (B, N, x_dim)
    B, N, x_dim, d_dim, z1_dim = 2, 16, 4, 32, 8

    key = jax.random.PRNGKey(0)
    k_x, k_p = jax.random.split(key)
    x = jax.random.normal(k_x, (B, N, x_dim), dtype=jnp.float32)
    params = init_params(k_p, x_dim, d_dim, z1_dim)

    out = g_inv_tanh(x, params)
    out = jax.block_until_ready(out)

    ref = _reference(x, params)
    assert out.shape == (B, z1_dim)
    assert jnp.allclose(out, ref, atol=1e-4, rtol=1e-4), (
        f"max abs err = {jnp.max(jnp.abs(out - ref))}")

    print("KERNEL_OK")
</pallas_src>

<mosaic_0001>
module attributes {stable_mosaic.version = 11 : i64} {
  func.func @kernel(%arg0: i32, %arg1: memref<32x4xf32, #tpu.memory_space<vmem>>, %arg2: memref<4x32xf32, #tpu.memory_space<vmem>>, %arg3: memref<1x32xf32, #tpu.memory_space<vmem>>, %arg4: memref<4x32xf32, #tpu.memory_space<vmem>>, %arg5: memref<32x32xf32, #tpu.memory_space<vmem>>, %arg6: memref<1x32xf32, #tpu.memory_space<vmem>>, %arg7: memref<32x32xf32, #tpu.memory_space<vmem>>, %arg8: memref<32x32xf32, #tpu.memory_space<vmem>>, %arg9: memref<1x32xf32, #tpu.memory_space<vmem>>, %arg10: memref<32x32xf32, #tpu.memory_space<vmem>>, %arg11: memref<32x32xf32, #tpu.memory_space<vmem>>, %arg12: memref<1x32xf32, #tpu.memory_space<vmem>>, %arg13: memref<32x8xf32, #tpu.memory_space<vmem>>, %arg14: memref<1x8xf32, #tpu.memory_space<vmem>>, %arg15: memref<2x8xf32, #tpu.memory_space<vmem>>) attributes {dimension_semantics = [#tpu.dimension_semantics<parallel>], iteration_bounds = array<i64: 1>, scalar_prefetch = 0 : i64, scratch_operands = 0 : i64, tpu.core_type = #tpu.core_type<tc>, window_params = [{transform_indices = @transform_0, window_bounds = array<i64: 32, 4>}, {pipeline_mode = #tpu.pipeline_mode<synchronous>, transform_indices = @transform_1, window_bounds = array<i64: 4, 32>}, {pipeline_mode = #tpu.pipeline_mode<synchronous>, transform_indices = @transform_2, window_bounds = array<i64: 1, 32>}, {pipeline_mode = #tpu.pipeline_mode<synchronous>, transform_indices = @transform_3, window_bounds = array<i64: 4, 32>}, {pipeline_mode = #tpu.pipeline_mode<synchronous>, transform_indices = @transform_4, window_bounds = array<i64: 32, 32>}, {pipeline_mode = #tpu.pipeline_mode<synchronous>, transform_indices = @transform_5, window_bounds = array<i64: 1, 32>}, {pipeline_mode = #tpu.pipeline_mode<synchronous>, transform_indices = @transform_6, window_bounds = array<i64: 32, 32>}, {pipeline_mode = #tpu.pipeline_mode<synchronous>, transform_indices = @transform_7, window_bounds = array<i64: 32, 32>}, {pipeline_mode = #tpu.pipeline_mode<synchronous>, transform_indices = @transform_8, window_bounds = array<i64: 1, 32>}, {pipeline_mode = #tpu.pipeline_mode<synchronous>, transform_indices = @transform_9, window_bounds = array<i64: 32, 32>}, {pipeline_mode = #tpu.pipeline_mode<synchronous>, transform_indices = @transform_10, window_bounds = array<i64: 32, 32>}, {pipeline_mode = #tpu.pipeline_mode<synchronous>, transform_indices = @transform_11, window_bounds = array<i64: 1, 32>}, {pipeline_mode = #tpu.pipeline_mode<synchronous>, transform_indices = @transform_12, window_bounds = array<i64: 32, 8>}, {pipeline_mode = #tpu.pipeline_mode<synchronous>, transform_indices = @transform_13, window_bounds = array<i64: 1, 8>}, {transform_indices = @transform_14, window_bounds = array<i64: 2, 8>}]} {
    %c0 = arith.constant 0 : index
    %c0_0 = arith.constant 0 : index
    %0 = vector.load %arg1[%c0, %c0_0] : memref<32x4xf32, #tpu.memory_space<vmem>>, vector<32x4xf32>
    %c0_1 = arith.constant 0 : index
    %c0_2 = arith.constant 0 : index
    %1 = vector.load %arg2[%c0_1, %c0_2] : memref<4x32xf32, #tpu.memory_space<vmem>>, vector<4x32xf32>
    %cst = arith.constant dense<0.000000e+00> : vector<32x32xf32>
    %2 = tpu.matmul %0, %1, %cst {dimension_numbers = #tpu.dot_dimension_numbers<[1], [0], [0], [1], [0, 0, 1, 1], [], []>} : vector<32x4xf32>, vector<4x32xf32>, vector<32x32xf32> -> vector<32x32xf32>
    %c0_3 = arith.constant 0 : index
    %c0_4 = arith.constant 0 : index
    %3 = vector.load %arg3[%c0_3, %c0_4] : memref<1x32xf32, #tpu.memory_space<vmem>>, vector<1x32xf32>
    %4 = vector.broadcast %3 : vector<1x32xf32> to vector<32x32xf32>
    %5 = arith.addf %2, %4 : vector<32x32xf32>
    %6 = vector.shape_cast %0 : vector<32x4xf32> to vector<2x16x4xf32>
    %cst_5 = arith.constant dense<0.000000e+00> : vector<2x4xf32>
    %7 = vector.multi_reduction <add>, %6, %cst_5 [1] : vector<2x16x4xf32> to vector<2x4xf32>
    %cst_6 = arith.constant 6.250000e-02 : f32
    %8 = vector.broadcast %cst_6 : f32 to vector<2x4xf32>
    %9 = arith.mulf %7, %8 : vector<2x4xf32>
    %c0_7 = arith.constant 0 : index
    %c0_8 = arith.constant 0 : index
    %10 = vector.load %arg4[%c0_7, %c0_8] : memref<4x32xf32, #tpu.memory_space<vmem>>, vector<4x32xf32>
    %cst_9 = arith.constant dense<0.000000e+00> : vector<2x32xf32>
    %11 = tpu.matmul %9, %10, %cst_9 {dimension_numbers = #tpu.dot_dimension_numbers<[1], [0], [0], [1], [0, 0, 1, 1], [], []>} : vector<2x4xf32>, vector<4x32xf32>, vector<2x32xf32> -> vector<2x32xf32>
    %12 = vector.shape_cast %5 : vector<32x32xf32> to vector<2x16x32xf32>
    %13 = vector.shape_cast %11 : vector<2x32xf32> to vector<2x1x32xf32>
    %14 = vector.broadcast %13 : vector<2x1x32xf32> to vector<2x16x32xf32>
    %15 = arith.subf %12, %14 : vector<2x16x32xf32>
    %16 = math.tanh %15 : vector<2x16x32xf32>
    %17 = vector.shape_cast %16 : vector<2x16x32xf32> to vector<32x32xf32>
    %c0_10 = arith.constant 0 : index
    %c0_11 = arith.constant 0 : index
    %18 = vector.load %arg5[%c0_10, %c0_11] : memref<32x32xf32, #tpu.memory_space<vmem>>, vector<32x32xf32>
    %cst_12 = arith.constant dense<0.000000e+00> : vector<32x32xf32>
    %19 = tpu.matmul %17, %18, %cst_12 {dimension_numbers = #tpu.dot_dimension_numbers<[1], [0], [0], [1], [0, 0, 1, 1], [], []>} : vector<32x32xf32>, vector<32x32xf32>, vector<32x32xf32> -> vector<32x32xf32>
    %c0_13 = arith.constant 0 : index
    %c0_14 = arith.constant 0 : index
    %20 = vector.load %arg6[%c0_13, %c0_14] : memref<1x32xf32, #tpu.memory_space<vmem>>, vector<1x32xf32>
    %21 = vector.broadcast %20 : vector<1x32xf32> to vector<32x32xf32>
    %22 = arith.addf %19, %21 : vector<32x32xf32>
    %23 = vector.shape_cast %17 : vector<32x32xf32> to vector<2x16x32xf32>
    %cst_15 = arith.constant dense<0.000000e+00> : vector<2x32xf32>
    %24 = vector.multi_reduction <add>, %23, %cst_15 [1] : vector<2x16x32xf32> to vector<2x32xf32>
    %cst_16 = arith.constant 6.250000e-02 : f32
    %25 = vector.broadcast %cst_16 : f32 to vector<2x32xf32>
    %26 = arith.mulf %24, %25 : vector<2x32xf32>
    %c0_17 = arith.constant 0 : index
    %c0_18 = arith.constant 0 : index
    %27 = vector.load %arg7[%c0_17, %c0_18] : memref<32x32xf32, #tpu.memory_space<vmem>>, vector<32x32xf32>
    %cst_19 = arith.constant dense<0.000000e+00> : vector<2x32xf32>
    %28 = tpu.matmul %26, %27, %cst_19 {dimension_numbers = #tpu.dot_dimension_numbers<[1], [0], [0], [1], [0, 0, 1, 1], [], []>} : vector<2x32xf32>, vector<32x32xf32>, vector<2x32xf32> -> vector<2x32xf32>
    %29 = vector.shape_cast %22 : vector<32x32xf32> to vector<2x16x32xf32>
    %30 = vector.shape_cast %28 : vector<2x32xf32> to vector<2x1x32xf32>
    %31 = vector.broadcast %30 : vector<2x1x32xf32> to vector<2x16x32xf32>
    %32 = arith.subf %29, %31 : vector<2x16x32xf32>
    %33 = math.tanh %32 : vector<2x16x32xf32>
    %34 = vector.shape_cast %33 : vector<2x16x32xf32> to vector<32x32xf32>
    %c0_20 = arith.constant 0 : index
    %c0_21 = arith.constant 0 : index
    %35 = vector.load %arg8[%c0_20, %c0_21] : memref<32x32xf32, #tpu.memory_space<vmem>>, vector<32x32xf32>
    %cst_22 = arith.constant dense<0.000000e+00> : vector<32x32xf32>
    %36 = tpu.matmul %34, %35, %cst_22 {dimension_numbers = #tpu.dot_dimension_numbers<[1], [0], [0], [1], [0, 0, 1, 1], [], []>} : vector<32x32xf32>, vector<32x32xf32>, vector<32x32xf32> -> vector<32x32xf32>
    %c0_23 = arith.constant 0 : index
    %c0_24 = arith.constant 0 : index
    %37 = vector.load %arg9[%c0_23, %c0_24] : memref<1x32xf32, #tpu.memory_space<vmem>>, vector<1x32xf32>
    %38 = vector.broadcast %37 : vector<1x32xf32> to vector<32x32xf32>
    %39 = arith.addf %36, %38 : vector<32x32xf32>
    %40 = vector.shape_cast %34 : vector<32x32xf32> to vector<2x16x32xf32>
    %cst_25 = arith.constant dense<0.000000e+00> : vector<2x32xf32>
    %41 = vector.multi_reduction <add>, %40, %cst_25 [1] : vector<2x16x32xf32> to vector<2x32xf32>
    %cst_26 = arith.constant 6.250000e-02 : f32
    %42 = vector.broadcast %cst_26 : f32 to vector<2x32xf32>
    %43 = arith.mulf %41, %42 : vector<2x32xf32>
    %c0_27 = arith.constant 0 : index
    %c0_28 = arith.constant 0 : index
    %44 = vector.load %arg10[%c0_27, %c0_28] : memref<32x32xf32, #tpu.memory_space<vmem>>, vector<32x32xf32>
    %cst_29 = arith.constant dense<0.000000e+00> : vector<2x32xf32>
    %45 = tpu.matmul %43, %44, %cst_29 {dimension_numbers = #tpu.dot_dimension_numbers<[1], [0], [0], [1], [0, 0, 1, 1], [], []>} : vector<2x32xf32>, vector<32x32xf32>, vector<2x32xf32> -> vector<2x32xf32>
    %46 = vector.shape_cast %39 : vector<32x32xf32> to vector<2x16x32xf32>
    %47 = vector.shape_cast %45 : vector<2x32xf32> to vector<2x1x32xf32>
    %48 = vector.broadcast %47 : vector<2x1x32xf32> to vector<2x16x32xf32>
    %49 = arith.subf %46, %48 : vector<2x16x32xf32>
    %50 = math.tanh %49 : vector<2x16x32xf32>
    %51 = vector.shape_cast %50 : vector<2x16x32xf32> to vector<32x32xf32>
    %52 = vector.shape_cast %51 : vector<32x32xf32> to vector<2x16x32xf32>
    %cst_30 = arith.constant dense<0xFF800000> : vector<2x32xf32>
    %53 = vector.multi_reduction <maximumf>, %52, %cst_30 [1] : vector<2x16x32xf32> to vector<2x32xf32>
    %c0_31 = arith.constant 0 : index
    %c0_32 = arith.constant 0 : index
    %54 = vector.load %arg11[%c0_31, %c0_32] : memref<32x32xf32, #tpu.memory_space<vmem>>, vector<32x32xf32>
    %cst_33 = arith.constant dense<0.000000e+00> : vector<2x32xf32>
    %55 = tpu.matmul %53, %54, %cst_33 {dimension_numbers = #tpu.dot_dimension_numbers<[1], [0], [0], [1], [0, 0, 1, 1], [], []>} : vector<2x32xf32>, vector<32x32xf32>, vector<2x32xf32> -> vector<2x32xf32>
    %c0_34 = arith.constant 0 : index
    %c0_35 = arith.constant 0 : index
    %56 = vector.load %arg12[%c0_34, %c0_35] : memref<1x32xf32, #tpu.memory_space<vmem>>, vector<1x32xf32>
    %57 = vector.broadcast %56 : vector<1x32xf32> to vector<2x32xf32>
    %58 = arith.addf %55, %57 : vector<2x32xf32>
    %59 = math.tanh %58 : vector<2x32xf32>
    %c0_36 = arith.constant 0 : index
    %c0_37 = arith.constant 0 : index
    %60 = vector.load %arg13[%c0_36, %c0_37] : memref<32x8xf32, #tpu.memory_space<vmem>>, vector<32x8xf32>
    %cst_38 = arith.constant dense<0.000000e+00> : vector<2x8xf32>
    %61 = tpu.matmul %59, %60, %cst_38 {dimension_numbers = #tpu.dot_dimension_numbers<[1], [0], [0], [1], [0, 0, 1, 1], [], []>} : vector<2x32xf32>, vector<32x8xf32>, vector<2x8xf32> -> vector<2x8xf32>
    %c0_39 = arith.constant 0 : index
    %c0_40 = arith.constant 0 : index
    %62 = vector.load %arg14[%c0_39, %c0_40] : memref<1x8xf32, #tpu.memory_space<vmem>>, vector<1x8xf32>
    %63 = vector.broadcast %62 : vector<1x8xf32> to vector<2x8xf32>
    %64 = arith.addf %61, %63 : vector<2x8xf32>
    %c0_41 = arith.constant 0 : index
    %c0_42 = arith.constant 0 : index
    %65 = vector.load %arg15[%c0_41, %c0_42] : memref<2x8xf32, #tpu.memory_space<vmem>>, vector<2x8xf32>
    tpu.vector_store %arg15[%c0_41, %c0_42], %64 {strides = array<i32>} : memref<2x8xf32, #tpu.memory_space<vmem>>, vector<2x8xf32>,
    return
  }
  func.func @transform_0(%arg0: i32) -> (i32, i32) {
    %c0_i32 = arith.constant 0 : i32
    %c0_i32_0 = arith.constant 0 : i32
    return %arg0, %c0_i32 : i32, i32
  }
  func.func @transform_1(%arg0: i32) -> (i32, i32) {
    %c0_i32 = arith.constant 0 : i32
    %c0_i32_0 = arith.constant 0 : i32
    %c0_i32_1 = arith.constant 0 : i32
    return %c0_i32, %c0_i32_0 : i32, i32
  }
  func.func @transform_2(%arg0: i32) -> (i32, i32) {
    %c0_i32 = arith.constant 0 : i32
    %c0_i32_0 = arith.constant 0 : i32
    %c0_i32_1 = arith.constant 0 : i32
    return %c0_i32, %c0_i32_0 : i32, i32
  }
  func.func @transform_3(%arg0: i32) -> (i32, i32) {
    %c0_i32 = arith.constant 0 : i32
    %c0_i32_0 = arith.constant 0 : i32
    %c0_i32_1 = arith.constant 0 : i32
    return %c0_i32, %c0_i32_0 : i32, i32
  }
  func.func @transform_4(%arg0: i32) -> (i32, i32) {
    %c0_i32 = arith.constant 0 : i32
    %c0_i32_0 = arith.constant 0 : i32
    %c0_i32_1 = arith.constant 0 : i32
    return %c0_i32, %c0_i32_0 : i32, i32
  }
  func.func @transform_5(%arg0: i32) -> (i32, i32) {
    %c0_i32 = arith.constant 0 : i32
    %c0_i32_0 = arith.constant 0 : i32
    %c0_i32_1 = arith.constant 0 : i32
    return %c0_i32, %c0_i32_0 : i32, i32
  }
  func.func @transform_6(%arg0: i32) -> (i32, i32) {
    %c0_i32 = arith.constant 0 : i32
    %c0_i32_0 = arith.constant 0 : i32
    %c0_i32_1 = arith.constant 0 : i32
    return %c0_i32, %c0_i32_0 : i32, i32
  }
  func.func @transform_7(%arg0: i32) -> (i32, i32) {
    %c0_i32 = arith.constant 0 : i32
    %c0_i32_0 = arith.constant 0 : i32
    %c0_i32_1 = arith.constant 0 : i32
    return %c0_i32, %c0_i32_0 : i32, i32
  }
  func.func @transform_8(%arg0: i32) -> (i32, i32) {
    %c0_i32 = arith.constant 0 : i32
    %c0_i32_0 = arith.constant 0 : i32
    %c0_i32_1 = arith.constant 0 : i32
    return %c0_i32, %c0_i32_0 : i32, i32
  }
  func.func @transform_9(%arg0: i32) -> (i32, i32) {
    %c0_i32 = arith.constant 0 : i32
    %c0_i32_0 = arith.constant 0 : i32
    %c0_i32_1 = arith.constant 0 : i32
    return %c0_i32, %c0_i32_0 : i32, i32
  }
  func.func @transform_10(%arg0: i32) -> (i32, i32) {
    %c0_i32 = arith.constant 0 : i32
    %c0_i32_0 = arith.constant 0 : i32
    %c0_i32_1 = arith.constant 0 : i32
    return %c0_i32, %c0_i32_0 : i32, i32
  }
  func.func @transform_11(%arg0: i32) -> (i32, i32) {
    %c0_i32 = arith.constant 0 : i32
    %c0_i32_0 = arith.constant 0 : i32
    %c0_i32_1 = arith.constant 0 : i32
    return %c0_i32, %c0_i32_0 : i32, i32
  }
  func.func @transform_12(%arg0: i32) -> (i32, i32) {
    %c0_i32 = arith.constant 0 : i32
    %c0_i32_0 = arith.constant 0 : i32
    %c0_i32_1 = arith.constant 0 : i32
    return %c0_i32, %c0_i32_0 : i32, i32
  }
  func.func @transform_13(%arg0: i32) -> (i32, i32) {
    %c0_i32 = arith.constant 0 : i32
    %c0_i32_0 = arith.constant 0 : i32
    %c0_i32_1 = arith.constant 0 : i32
    return %c0_i32, %c0_i32_0 : i32, i32
  }
  func.func @transform_14(%arg0: i32) -> (i32, i32) {
    %c0_i32 = arith.constant 0 : i32
    %c0_i32_0 = arith.constant 0 : i32
    return %arg0, %c0_i32 : i32, i32
  }
}

</mosaic_0001>

<bundles_post_ra>
// kernel: tpu_custom_call.1
= control target key start
LH: loop header
LB: loop body
LE: loop exit
PB: predicated region body
PF: predicated region fallthrough
CT: control target
= control target key end

     0   :  { %19 = vsyncpa [#allocation3], 0  ;;  %s942_s0 = inlined_call_operand.vmem [shape: f32[32,4], index: 0, kind: input, shape index: {}]   ;;  %s943_s1 = inlined_call_operand.vmem [shape: f32[4,32], index: 1, kind: input, shape index: {}]   ;;  %s944_s2 = inlined_call_operand.vmem [shape: f32[1,32], index: 2, kind: input, shape index: {}]   ;;  %s945_s3 = inlined_call_operand.hbm [shape: f32[4,32], index: 3, kind: input, shape index: {}]   ;;  %s946_s4 = inlined_call_operand.vmem [shape: f32[32,32], index: 4, kind: input, shape index: {}]   ;;  %s947_s5 = inlined_call_operand.vmem [shape: f32[1,32], index: 5, kind: input, shape index: {}]   ;;  %s948_s6 = inlined_call_operand.vmem [shape: f32[32,32], index: 6, kind: input, shape index: {}]   ;;  %s949_s7 = inlined_call_operand.hbm [shape: f32[32,32], index: 7, kind: input, shape index: {}]   ;;  %s950_s8 = inlined_call_operand.vmem [shape: f32[1,32], index: 8, kind: input, shape index: {}]   ;;  %s951_s9 = inlined_call_operand.hbm [shape: f32[32,32], index: 9, kind: input, shape index: {}]   ;;  %s952_s10 = inlined_call_operand.hbm [shape: f32[32,32], index: 10, kind: input, shape index: {}]   ;;  %s953_s11 = inlined_call_operand.vmem [shape: f32[1,32], index: 11, kind: input, shape index: {}]   ;;  %s954_s12 = inlined_call_operand.vmem [shape: f32[32,8], index: 12, kind: input, shape index: {}]   ;;  %s955_s13 = inlined_call_operand.vmem [shape: f32[1,8], index: 13, kind: input, shape index: {}]   ;;  %s956_s14 = inlined_call_operand.hbm [shape: f32[2,8], index: 14, kind: output, shape index: {}]  }
   0x1   :  { %20 = vsyncpa [#allocation6], 0 }
   0x2   :  { %21 = vsyncpa [#allocation9], 0  ;;  %s50_s15 = sshll.u32 %s949_s7, 4  ;;  %s51_s15 = int_to_ptr.hbm [resolvable:$true] %s50_s15 }
   0x3   :  { %22 = vsyncpa [#allocation4], 0  ;;  %s742_s16 = smov [#allocation5]   ;;  %s34_s20 = sshll.u32 %s945_s3, 4  ;;  %s35_s20 = int_to_ptr.hbm [resolvable:$true] %s34_s20 }
   0x4   :  { %s52_s17 = sshll.u32 %s742_s16, 4  ;;  %s743_s21 = smov 128   ;;  %s53_s17 = int_to_ptr.vmem [resolvable:$true] %s52_s17 }
   0x5   :  { %s744_s22 = smov 8   ;;  %s745_s23 = smov [#allocation2]  }
   0x6   :  { %58 = dma.hbm_to_vmem [thread:$0]  %s51_s15, 512, %s53_s17, [#allocation6], %s743_s21, %s743_s21, %s744_s22  }
   0x7   :  { %s36_s24 = sshll.u32 %s745_s23, 4  ;;  %s65_s27 = sshll.u32 %s951_s9, 4  ;;  %s37_s24 = int_to_ptr.vmem [resolvable:$true] %s36_s24  ;;  %s66_s27 = int_to_ptr.hbm [resolvable:$true] %s65_s27 }
   0x8   :  { %39 = dma.hbm_to_vmem [thread:$0]  %s35_s20, 64, %s37_s24, [#allocation3]  }
   0x9   :  { %s78_s29 = sshll.u32 %s952_s10, 4  ;;  %s746_s30 = smov [#allocation7]   ;;  %s79_s29 = int_to_ptr.hbm [resolvable:$true] %s78_s29 }
   0xa   :  { %s67_s16 = sshll.u32 %s746_s30, 4  ;;  %s747_s3 = smov [#allocation8]   ;;  %s68_s16 = int_to_ptr.vmem [resolvable:$true] %s67_s16 }
   0xb   :  { %73 = dma.hbm_to_vmem [thread:$0]  %s66_s27, 512, %s68_s16, [#allocation6], %s743_s21, %s743_s21, %s744_s22  }
   0xc   :  { %s80_s15 = sshll.u32 %s747_s3, 4  ;;  %s81_s15 = int_to_ptr.vmem [resolvable:$true] %s80_s15 }
   0xd   :  { %86 = dma.hbm_to_vmem [thread:$0]  %s79_s29, 512, %s81_s15, [#allocation9], %s743_s21, %s743_s21, %s744_s22  }
   0xe   :  { %734 = dma.done.wait [#allocation3], 64  }
   0xf   :  { %735 = vsyncadd [#allocation3], 4294967232 }
  0x10   :  { %736 = dma.done.wait [#allocation6], 1024  }
  0x11   :  { %737 = vsyncadd [#allocation6], 4294966272 }
  0x12   :  { %738 = dma.done.wait [#allocation9], 512  }
  0x13   :  { %739 = vsyncadd [#allocation9], 4294966784  ;;  %vm131_vm0 = vcmask 1043456   ;;  %vm118_vm1 = vcmask 31744   ;;  %v113_v0 = vld [vmem:[%s943_s1] sm:$0xf] }
  0x14   :  { %v109_v1 = vld [vmem:[%s942_s0] sm:$0xff]  ;;  %v110_v2 = vld [vmem:[%s942_s0 + $0x8] sm:$0xff]  ;;  %557 = vmatpush.msk.msra.mxu0 %vm131_vm0, %v113_v0  ;;  %v111_v5 = vld [vmem:[%s942_s0 + $0x10] sm:$0xff]  ;;  %vm187_vm2 = vcmask 1041409   ;;  %vm236_vm3 = vcmask 261120   ;;  %s748_s29 = smov [#allocation10]  }
  0x15   :  { %v164_v3 = vsel %vm118_vm1, %v109_v1, 0.0  ;;  %v165_v4 = vsel %vm118_vm1, %v110_v2, 0.0  ;;  %v112_v6 = vld [vmem:[%s942_s0 + $0x18] sm:$0xff]  ;;  %v184_v7 = vld [vmem:[#allocation2] sm:$0xf]  ;;  %558 = vmatmul.msk.f32.vlgmr.msra.gmra.mxu0 %vm118_vm1, %v109_v1  ;;  %v173_v9 = vsel %vm118_vm1, %v111_v5, 0.0 }
  0x16   :  { %v166_v8 = vadd.f32 %v165_v4, %v164_v3  ;;  %v174_v10 = vsel %vm118_vm1, %v112_v6, 0.0  ;;  %562 = vmatpush.msk.msra.mxu1 %vm131_vm0, %v184_v7  ;;  %v231_v27 = vld [vmem:[%s946_s4 + $0x18] sm:$0xff]  ;;  %v230_v28 = vld [vmem:[%s946_s4 + $0x10] sm:$0xff]  ;;  %v229_v29 = vld [vmem:[%s946_s4 + $0x8] sm:$0xff]  ;;  %s543_s30 = sshll.u32 %s748_s29, 4  ;;  %s545_s3 = sshll.u32 %s956_s14, 4  ;;  %s544_s30 = int_to_ptr.vmem [resolvable:$true] %s543_s30  ;;  %s546_s3 = int_to_ptr.hbm [resolvable:$true] %s545_s3 }
  0x17   :  { %v175_v11 = vadd.f32 %v174_v10, %v173_v9  ;;  %261 = vmatpush.msra.mxu2 %v231_v27  ;;  %v228_v30 = vld [vmem:[%s946_s4] sm:$0xff]  ;;  %v301_v33 = vld [vmem:[%s948_s6 + $0x18] sm:$0xff]  ;;  %v300_v34 = vld [vmem:[%s948_s6 + $0x10] sm:$0xff]  ;;  %vm536_vm4 = vcmask 58368  }
  0x18   :  { %v167_v12 = vrot.slane %v166_v8, 4  ;;  %v583_v35 = vld [vmem:[%s944_s2] ss:$0 sm:$0xff]  ;;  %319 = vmatpush.msra.mxu3 %v301_v33  ;;  %v299_v37 = vld [vmem:[%s948_s6 + $0x8] sm:$0xff] }
  0x19   :  { %v176_v13 = vrot.slane %v175_v11, 4  ;;  %262 = vmatpush.msra.mxu2 %v230_v28  ;;  %v298_v47 = vld [vmem:[%s948_s6] sm:$0xff] }
  0x1a   :  { %v168_v14 = vadd.f32 %v167_v12, %v166_v8  ;;  %320 = vmatpush.msra.mxu3 %v300_v34 }
  0x1b   :  { %v177_v15 = vadd.f32 %v176_v13, %v175_v11  ;;  %263 = vmatpush.msra.mxu2 %v229_v29  ;;  %v344_v13 = vld [vmem:[#allocation5 + $0x18] sm:$0xff] }
  0x1c   :  { %v169_v16 = vrot.slane %v168_v14, 2  ;;  %321 = vmatpush.msra.mxu3 %v299_v37  ;;  %373 = vmatpush.msrb.mxu1 %v344_v13 }
  0x1d   :  { %v178_v17 = vrot.slane %v177_v15, 2  ;;  %559 = vmatmul.msk.f32.gmra.mxu0 %vm118_vm1, %v110_v2  ;;  %264 = vmatpush.msra.mxu2 %v228_v30 }
  0x1e   :  { %v170_v18 = vadd.f32 %v169_v16, %v168_v14  ;;  %322 = vmatpush.msra.mxu3 %v298_v47  ;;  %v342_v16 = vld [vmem:[#allocation5 + $0x8] sm:$0xff] }
  0x1f   :  { %v179_v19 = vadd.f32 %v178_v17, %v177_v15  ;;  %v343_v15 = vld [vmem:[#allocation5 + $0x10] sm:$0xff]  ;;  %v341_v17 = vld [vmem:[#allocation5] sm:$0xff] }
  0x20   :  { %v171_v20 = vrot.slane %v170_v18, 1  ;;  %374 = vmatpush.msrb.mxu1 %v343_v15 }
  0x21   :  { %v180_v21 = vrot.slane %v179_v19, 1 }
  0x22   :  { %v172_v22 = vadd.f32 %v171_v20, %v170_v18  ;;  %375 = vmatpush.msrb.mxu1 %v342_v16  ;;  %v412_v20 = vld [vmem:[#allocation7 + $0x10] sm:$0xff] }
  0x23   :  { %v181_v23 = vadd.f32 %v180_v21, %v179_v19  ;;  %v413_v19 = vld [vmem:[#allocation7 + $0x18] sm:$0xff] }
  0x24   :  { %v182_v24 = vmul.f32 0.0625, %v172_v22  ;;  %376 = vmatpush.msrb.mxu1 %v341_v17  ;;  %431 = vmatpush.msrb.mxu3 %v413_v19  ;;  %v411_v22 = vld [vmem:[#allocation7 + $0x8] sm:$0xff] }
  0x25   :  { %v183_v25 = vmul.f32 0.0625, %v181_v23  ;;  %560 = vmatmul.msk.f32.gmra.mxu0 %vm118_vm1, %v111_v5  ;;  %v410_v23 = vld [vmem:[#allocation7] sm:$0xff] }
  0x26   :  { %432 = vmatpush.msrb.mxu3 %v412_v20 }
  0x27   :  { %v188_v26 = vsel %vm187_vm2, %v183_v25, %v182_v24  ;;  %v584_v24 = vld [vmem:[%s947_s5] ss:$0 sm:$0xff] }
  0x28   :  { %563 = vmatmul.msk.f32.vlgmr.msra.gmra.mxu1 %vm118_vm1, %v188_v26  ;;  %433 = vmatpush.msrb.mxu3 %v411_v22 }
  0x2a   :  { %434 = vmatpush.msrb.mxu3 %v410_v23 }
  0x2d   :  { %561 = vmatmul.msk.f32.gmra.mxu0 %vm118_vm1, %v112_v6 }
  0x92   :  { %v152_v31 = vpop.f32.mrf.mxu0 }
  0x93   :  { %v153_v39 = vadd.f32 %v583_v35, %v152_v31 }
  0x9a   :  { %v155_v32 = vpop.f32.mrf.mxu0 }
  0x9b   :  { %v156_v40 = vadd.f32 %v583_v35, %v155_v32 }
  0xa2   :  { %v158_v36 = vpop.f32.mrf.mxu0 }
  0xa3   :  { %v159_v43 = vadd.f32 %v583_v35, %v158_v36 }
  0xa5   :  { %v211_v38 = vpop.f32.mrf.mxu1 }
  0xa6   :  { %v215_v41 = vrot.slane %v211_v38, 1  ;;  %v216_v42 = vperm.slane %v211_v38, 0 }
  0xa8   :  { %v217_v44 = vperm.slane %v215_v41, 0  ;;  %v220_v45 = vsub.f32 %v153_v39, %v216_v42  ;;  %v221_v46 = vsub.f32 %v156_v40, %v216_v42 }
  0xaa   :  { %v222_v48 = vsub.f32 %v159_v43, %v217_v44  ;;  %588 = vtanh.f32 %v220_v45  ;;  %v161_v49 = vpop.f32.mrf.mxu0 }
  0xab   :  { %590 = vtanh.f32 %v221_v46  ;;  %v162_v50 = vadd.f32 %v583_v35, %v161_v49 }
  0xac   :  { %592 = vtanh.f32 %v222_v48 }
  0xad   :  { %v223_v51 = vsub.f32 %v162_v50, %v217_v44 }
  0xaf   :  { %594 = vtanh.f32 %v223_v51 }
  0xb0   :  { %v589_v52 = vpop.eup %588 }
  0xb1   :  { %v591_v53 = vpop.eup %590  ;;  %v278_v54 = vsel %vm236_vm3, %v589_v52, 0.0  ;;  %564 = vmatmul.msk.f32.vlgmr.msra.gmra.mxu2 %vm236_vm3, %v589_v52 }
  0xb2   :  { %v279_v55 = vsel %vm236_vm3, %v591_v53, 0.0  ;;  %v593_v57 = vpop.eup %592 }
  0xb3   :  { %v280_v56 = vadd.f32 %v279_v55, %v278_v54  ;;  %v287_v60 = vsel %vm236_vm3, %v593_v57, 0.0 }
  0xb5   :  { %v281_v58 = vrot.slane %v280_v56, 4  ;;  %v595_v59 = vpop.eup %594 }
  0xb6   :  { %v288_v61 = vsel %vm236_vm3, %v595_v59, 0.0 }
  0xb7   :  { %v282_v62 = vadd.f32 %v281_v58, %v280_v56  ;;  %v289_v63 = vadd.f32 %v288_v61, %v287_v60 }
  0xb9   :  { %565 = vmatmul.msk.f32.gmra.mxu2 %vm236_vm3, %v591_v53  ;;  %v283_v0 = vrot.slane %v282_v62, 2  ;;  %v290_v1 = vrot.slane %v289_v63, 4 }
  0xbb   :  { %v284_v2 = vadd.f32 %v283_v0, %v282_v62  ;;  %v291_v3 = vadd.f32 %v290_v1, %v289_v63  ;;  %v474_v1 = vld [vmem:[#allocation8 + $0x18] sm:$0xff] }
  0xbd   :  { %v285_v4 = vrot.slane %v284_v2, 1  ;;  %v292_v5 = vrot.slane %v291_v3, 2 }
  0xbf   :  { %v293_v6 = vadd.f32 %v292_v5, %v291_v3  ;;  %v286_v7 = vadd.f32 %v285_v4, %v284_v2  ;;  %v473_v2 = vld [vmem:[#allocation8 + $0x10] sm:$0xff]  ;;  %v472_v3 = vld [vmem:[#allocation8 + $0x8] sm:$0xff]  ;;  %v471_v5 = vld [vmem:[#allocation8] sm:$0xff] }
  0xc1   :  { %566 = vmatmul.msk.f32.gmra.mxu2 %vm236_vm3, %v593_v57  ;;  %v294_v8 = vrot.slane %v293_v6, 1  ;;  %v296_v10 = vmul.f32 0.0625, %v286_v7 }
  0xc3   :  { %v295_v9 = vadd.f32 %v294_v8, %v293_v6  ;;  %v585_v6 = vld [vmem:[%s950_s8] ss:$0 sm:$0xff] }
  0xc5   :  { %v297_v11 = vmul.f32 0.0625, %v295_v9 }
  0xc7   :  { %v304_v12 = vsel %vm187_vm2, %v297_v11, %v296_v10 }
  0xc8   :  { %568 = vmatmul.msk.f32.vlgmr.msra.gmra.mxu3 %vm236_vm3, %v304_v12 }
  0xc9   :  { %567 = vmatmul.msk.f32.gmra.mxu2 %vm236_vm3, %v595_v59  ;;  %496 = vmatpush.msra.mxu3 %v474_v1 }
  0xcb   :  { %497 = vmatpush.msra.mxu3 %v473_v2 }
  0xcd   :  { %498 = vmatpush.msra.mxu3 %v472_v3 }
  0xcf   :  { %499 = vmatpush.msra.mxu3 %v471_v5 }
 0x134   :  { %v266_v14 = vpop.f32.mrf.mxu2 }
 0x135   :  { %v267_v27 = vadd.f32 %v584_v24, %v266_v14 }
 0x13c   :  { %v269_v18 = vpop.f32.mrf.mxu2 }
 0x13d   :  { %v270_v28 = vadd.f32 %v584_v24, %v269_v18 }
 0x144   :  { %v272_v21 = vpop.f32.mrf.mxu2 }
 0x145   :  { %v273_v31 = vadd.f32 %v584_v24, %v272_v21 }
 0x14b   :  { %v324_v26 = vpop.f32.mrf.mxu3 }
 0x14c   :  { %v275_v25 = vpop.f32.mrf.mxu2  ;;  %v328_v29 = vrot.slane %v324_v26, 1  ;;  %v329_v30 = vperm.slane %v324_v26, 0 }
 0x14d   :  { %v276_v32 = vadd.f32 %v584_v24, %v275_v25 }
 0x14e   :  { %v330_v33 = vperm.slane %v328_v29, 0  ;;  %v333_v34 = vsub.f32 %v267_v27, %v329_v30  ;;  %v334_v35 = vsub.f32 %v270_v28, %v329_v30 }
 0x150   :  { %v335_v36 = vsub.f32 %v273_v31, %v330_v33  ;;  %v336_v37 = vsub.f32 %v276_v32, %v330_v33  ;;  %596 = vtanh.f32 %v333_v34 }
 0x151   :  { %598 = vtanh.f32 %v334_v35 }
 0x152   :  { %600 = vtanh.f32 %v335_v36 }
 0x153   :  { %602 = vtanh.f32 %v336_v37 }
 0x156   :  { %v597_v38 = vpop.eup %596 }
 0x157   :  { %v599_v39 = vpop.eup %598  ;;  %v390_v40 = vsel %vm236_vm3, %v597_v38, 0.0  ;;  %569 = vmatmul.msk.f32.vlgmr.msrb.gmra.mxu1 %vm236_vm3, %v597_v38 }
 0x158   :  { %v601_v41 = vpop.eup %600  ;;  %v391_v42 = vsel %vm236_vm3, %v599_v39, 0.0 }
 0x159   :  { %v603_v43 = vpop.eup %602  ;;  %v392_v44 = vadd.f32 %v391_v42, %v390_v40  ;;  %v399_v45 = vsel %vm236_vm3, %v601_v41, 0.0 }
 0x15a   :  { %v400_v46 = vsel %vm236_vm3, %v603_v43, 0.0 }
 0x15b   :  { %v393_v47 = vrot.slane %v392_v44, 4  ;;  %v401_v48 = vadd.f32 %v400_v46, %v399_v45  ;;  %v506_v45 = vld [vmem:[%s954_s12 + $0x8] sm:$0xff]  ;;  %v505_v46 = vld [vmem:[%s954_s12] sm:$0xff] }
 0x15d   :  { %v394_v49 = vadd.f32 %v393_v47, %v392_v44  ;;  %v402_v50 = vrot.slane %v401_v48, 4  ;;  %v507_v44 = vld [vmem:[%s954_s12 + $0x10] sm:$0xff]  ;;  %v586_v47 = vld [vmem:[%s953_s11] ss:$0 sm:$0xff] }
 0x15f   :  { %570 = vmatmul.msk.f32.gmra.mxu1 %vm236_vm3, %v599_v39  ;;  %v395_v51 = vrot.slane %v394_v49, 2  ;;  %v403_v52 = vadd.f32 %v402_v50, %v401_v48 }
 0x161   :  { %v396_v53 = vadd.f32 %v395_v51, %v394_v49  ;;  %v404_v54 = vrot.slane %v403_v52, 2  ;;  %v587_v51 = vld [vmem:[%s955_s13] ss:$0 sm:$0xff] }
 0x163   :  { %v397_v55 = vrot.slane %v396_v53, 1  ;;  %v405_v56 = vadd.f32 %v404_v54, %v403_v52 }
 0x165   :  { %v398_v57 = vadd.f32 %v397_v55, %v396_v53  ;;  %v406_v58 = vrot.slane %v405_v56, 1 }
 0x167   :  { %571 = vmatmul.msk.f32.gmra.mxu1 %vm236_vm3, %v601_v41  ;;  %v407_v59 = vadd.f32 %v406_v58, %v405_v56  ;;  %v408_v60 = vmul.f32 0.0625, %v398_v57 }
 0x169   :  { %v409_v61 = vmul.f32 0.0625, %v407_v59 }
 0x16b   :  { %v416_v62 = vsel %vm187_vm2, %v409_v61, %v408_v60 }
 0x16c   :  { %573 = vmatmul.msk.f32.vlgmr.msrb.gmra.mxu3 %vm236_vm3, %v416_v62 }
 0x16f   :  { %572 = vmatmul.msk.f32.gmra.mxu1 %vm236_vm3, %v603_v43  ;;  %v508_v43 = vld [vmem:[%s954_s12 + $0x18] sm:$0xff] }
 0x170   :  { %528 = vmatpush.msrb.mxu3 %v508_v43 }
 0x172   :  { %529 = vmatpush.msrb.mxu3 %v507_v44 }
 0x174   :  { %530 = vmatpush.msrb.mxu3 %v506_v45 }
 0x176   :  { %531 = vmatpush.msrb.mxu3 %v505_v46 }
 0x1d4   :  { %v378_v63 = vpop.f32.mrf.mxu1 }
 0x1d5   :  { %v379_v9 = vadd.f32 %v585_v6, %v378_v63 }
 0x1dc   :  { %v381_v0 = vpop.f32.mrf.mxu1 }
 0x1dd   :  { %v382_v10 = vadd.f32 %v585_v6, %v381_v0 }
 0x1e4   :  { %v384_v4 = vpop.f32.mrf.mxu1 }
 0x1e5   :  { %v385_v13 = vadd.f32 %v585_v6, %v384_v4 }
 0x1ec   :  { %v387_v7 = vpop.f32.mrf.mxu1 }
 0x1ed   :  { %v388_v14 = vadd.f32 %v585_v6, %v387_v7 }
 0x1ef   :  { %v436_v8 = vpop.f32.mrf.mxu3 }
 0x1f0   :  { %v440_v11 = vrot.slane %v436_v8, 1  ;;  %v441_v12 = vperm.slane %v436_v8, 0 }
 0x1f2   :  { %v442_v15 = vperm.slane %v440_v11, 0  ;;  %v445_v16 = vsub.f32 %v379_v9, %v441_v12  ;;  %v446_v17 = vsub.f32 %v382_v10, %v441_v12 }
 0x1f4   :  { %v447_v18 = vsub.f32 %v385_v13, %v442_v15  ;;  %v448_v19 = vsub.f32 %v388_v14, %v442_v15  ;;  %604 = vtanh.f32 %v445_v16 }
 0x1f5   :  { %606 = vtanh.f32 %v446_v17 }
 0x1f6   :  { %608 = vtanh.f32 %v447_v18 }
 0x1f7   :  { %610 = vtanh.f32 %v448_v19 }
 0x1fa   :  { %v605_v20 = vpop.eup %604 }
 0x1fb   :  { %v607_v21 = vpop.eup %606  ;;  %v453_v22 = vsel %vm236_vm3, %v605_v20, -inf }
 0x1fc   :  { %v609_v23 = vpop.eup %608  ;;  %v454_v24 = vsel %vm236_vm3, %v607_v21, -inf }
 0x1fd   :  { %v611_v25 = vpop.eup %610  ;;  %v455_v26 = vmax.f32 %v453_v22, %v454_v24  ;;  %v462_v27 = vsel %vm236_vm3, %v609_v23, -inf }
 0x1fe   :  { %v463_v28 = vsel %vm236_vm3, %v611_v25, -inf }
 0x1ff   :  { %v456_v29 = vrot.slane %v455_v26, 4  ;;  %v464_v30 = vmax.f32 %v462_v27, %v463_v28 }
 0x201   :  { %v465_v31 = vrot.slane %v464_v30, 4  ;;  %v457_v32 = vmax.f32 %v455_v26, %v456_v29 }
 0x203   :  { %v458_v33 = vrot.slane %v457_v32, 2  ;;  %v466_v34 = vmax.f32 %v464_v30, %v465_v31 }
 0x205   :  { %v459_v35 = vmax.f32 %v457_v32, %v458_v33  ;;  %v467_v36 = vrot.slane %v466_v34, 2 }
 0x207   :  { %v460_v37 = vrot.slane %v459_v35, 1  ;;  %v468_v38 = vmax.f32 %v466_v34, %v467_v36 }
 0x209   :  { %v469_v39 = vrot.slane %v468_v38, 1  ;;  %v461_v40 = vmax.f32 %v459_v35, %v460_v37 }
 0x20b   :  { %v470_v41 = vmax.f32 %v468_v38, %v469_v39 }
 0x20d   :  { %v481_v42 = vsel %vm187_vm2, %v470_v41, %v461_v40 }
 0x20e   :  { %574 = vmatmul.msk.f32.vlgmr.msra.gmra.mxu3 %vm236_vm3, %v481_v42 }
 0x291   :  { %v501_v48 = vpop.f32.mrf.mxu3 }
 0x292   :  { %v502_v49 = vadd.f32 %v586_v47, %v501_v48 }
 0x294   :  { %612 = vtanh.f32 %v502_v49 }
 0x29a   :  { %v613_v50 = vpop.eup %612 }
 0x29b   :  { %575 = vmatmul.msk.f32.vlgmr.msrb.gmra.mxu3 %vm236_vm3, %v613_v50 }
 0x31e   :  { %v533_v52 = vpop.f32.mrf.mxu3 }
 0x31f   :  { %v534_v53 = vadd.f32 %v587_v51, %v533_v52 }
 0x321   :  { %537 = vst.msk [vmem:[#allocation10] sm:$0x3] %vm536_vm4, %v534_v53 }
 0x322   :  { %548 = dma.vmem_to_hbm [thread:$0]  %s544_s30, 32, %s546_s3, [#allocation4]  }
 0x323   :  { %740 = dma.done.wait [#allocation4], 32  }
 0x324   :  { %741 = vsyncadd [#allocation4], 4294967264 }
 0x325   :  { %553 = vsyncpa [#allocation3], 1 }
 0x326   :  { %554 = vsyncpa [#allocation6], 1 }
 0x327   :  { %555 = vsyncpa [#allocation9], 1 }
 0x328   :  { %556 = vsyncpa [#allocation4], 1 }

</bundles_post_ra>
